<compile_context>
chip_gen: v5e
topology: v5e:2x2
jax: 0.10.0
libtpu: 0.0.40
codegen_flags: <defaults>
</compile_context>

<pallas_src>
import functools

import jax
import jax.numpy as jnp
from jax.experimental import pallas as pl
from jax.experimental.pallas import tpu as pltpu


def _bahdanau_kernel(dec_ref, enc_ref,
                     waT_ref, uaT_ref, bias_ref, v_ref,
                     ctx_ref, attn_ref, *, compute_dtype):
    # Per-grid-step views (one batch block):
    #   dec_ref : (BB, H)     enc_ref : (BB, T, H)
    #   waT_ref : (H, H)      uaT_ref : (H, H)
    #   bias_ref: (1, H)      v_ref   : (1, H)
    #   ctx_ref : (BB, H)     attn_ref: (BB, T)
    BB, T, H = enc_ref.shape

    enc = enc_ref[...].astype(compute_dtype)               # [BB, T, H]
    dec = dec_ref[...].astype(compute_dtype)               # [BB, H]

    # encoder_proj = Wa(h_j): one tall-M MXU matmul (bias folded elsewhere).
    enc_proj = jnp.dot(enc.reshape(BB * T, H),
                       waT_ref[...].astype(compute_dtype),
                       preferred_element_type=jnp.float32)  # [BB*T, H] f32

    # decoder_proj = Ua(s) + (Wa.b + Ua.b): combined bias added once on [BB, H].
    dec_proj = jnp.dot(dec, uaT_ref[...].astype(compute_dtype),
                       preferred_element_type=jnp.float32) + bias_ref[...]

    # e_{tj} = v . tanh(Wa h_j + Ua s + b)
    # (score-layer bias omitted: softmax is invariant to a constant shift)
    act = jnp.tanh(enc_proj.reshape(BB, T, H) + dec_proj[:, None, :])  # [BB, T, H]
    v_row = v_ref[...].reshape(1, 1, H).astype(jnp.float32)
    scores = jnp.sum(act * v_row, axis=-1)                  # [BB, T], T on lanes

    # softmax over the sequence (last) axis, in f32.
    m = jnp.max(scores, axis=-1, keepdims=True)
    e = jnp.exp(scores - m)
    attn = e / jnp.sum(e, axis=-1, keepdims=True)           # [BB, T]

    # c_b = attn_b @ enc_b  -> batched MXU contraction over T.
    ctx = jnp.einsum("bqt,bth->bqh",
                     attn[:, None, :].astype(compute_dtype), enc,
                     preferred_element_type=jnp.float32)[:, 0, :]      # [BB, H]

    ctx_ref[...] = ctx.astype(ctx_ref.dtype)
    attn_ref[...] = attn.astype(attn_ref.dtype)


def _round_up(x, m):
    return ((x + m - 1) // m) * m


def _pick_block_batch(B, T, H, in_itemsize, *, max_block_batch, vmem_budget_bytes):
    """Largest BB (multiple of 8) whose working set fits the VMEM budget."""
    # double-buffered pipeline blocks (enc, dec, ctx, attn) ...
    per_row = (2 * T * H + 2 * H + 2 * H + 2 * T) * in_itemsize
    # ... plus f32 in-kernel intermediates (enc_proj, act, scores/exp, ctx acc).
    per_row += (2 * T * H + 2 * T + 2 * H) * 4
    weights = (2 * H * H + 2 * H) * 4 * 2
    bb = (vmem_budget_bytes - weights) // max(per_row, 1)
    bb = max(8, (int(bb) // 8) * 8)
    bb = min(bb, max_block_batch, _round_up(B, 8))
    return bb


def bahdanau_attention(decoder_state, encoder_states, params, *,
                       max_block_batch=256, compute_dtype=jnp.float32):
    """decoder_state [B,H], encoder_states [B,T,H] -> (context [B,H], attn [B,T])."""
    B, T, H = encoder_states.shape
    out_dtype = jnp.float32

    BB = _pick_block_batch(B, T, H, encoder_states.dtype.itemsize,
                           max_block_batch=max_block_batch,
                           vmem_budget_bytes=40 * 1024 * 1024)
    B_pad = _round_up(B, BB)
    if B_pad != B:
        pad = B_pad - B
        decoder_state = jnp.pad(decoder_state, ((0, pad), (0, 0)))
        encoder_states = jnp.pad(encoder_states, ((0, pad), (0, 0), (0, 0)))

    waT, uaT = params["waT"], params["uaT"]
    v_row = params["v_row"]
    bias = params["wab"] + params["uab"]          # fold both Linear biases (tiny XLA op)

    # VMEM limit with headroom, capped below the physical ceiling (v7x = 64 MiB).
    blk_bytes = (BB * H + BB * T * H + BB * H + BB * T) * 4
    w_bytes = (2 * H * H + 2 * H) * 4
    vmem_limit = int(min(48 * 1024 * 1024,
                         max(16 * 1024 * 1024, 4 * blk_bytes + 2 * w_bytes)))

    grid_spec = pltpu.PrefetchScalarGridSpec(
        num_scalar_prefetch=0,
        grid=(B_pad // BB,),
        in_specs=[
            pl.BlockSpec((BB, H), lambda b: (b, 0)),         # decoder_state block
            pl.BlockSpec((BB, T, H), lambda b: (b, 0, 0)),   # encoder_states block
            pl.BlockSpec((H, H), lambda b: (0, 0)),          # Wa^T (constant)
            pl.BlockSpec((H, H), lambda b: (0, 0)),          # Ua^T (constant)
            pl.BlockSpec((1, H), lambda b: (0, 0)),          # combined bias
            pl.BlockSpec((1, H), lambda b: (0, 0)),          # v row
        ],
        out_specs=[
            pl.BlockSpec((BB, H), lambda b: (b, 0)),         # context
            pl.BlockSpec((BB, T), lambda b: (b, 0)),         # attn weights (lane-major)
        ],
    )

    kernel = functools.partial(_bahdanau_kernel, compute_dtype=compute_dtype)

    ctx, attn = pl.pallas_call(
        kernel,
        out_shape=(
            jax.ShapeDtypeStruct((B_pad, H), out_dtype),
            jax.ShapeDtypeStruct((B_pad, T), out_dtype),
        ),
        grid_spec=grid_spec,
        compiler_params=pltpu.CompilerParams(
            dimension_semantics=("parallel",),
            vmem_limit_bytes=vmem_limit),
    )(decoder_state, encoder_states, waT, uaT, bias, v_row)

    return ctx[:B], attn[:B]


def init_params(key, hidden_size):
    """Deterministic init mirroring nn.Linear's uniform(-1/sqrt(in), 1/sqrt(in))."""
    ks = jax.random.split(key, 6)
    bound = 1.0 / jnp.sqrt(hidden_size)
    u = lambda k, shape: jax.random.uniform(k, shape, jnp.float32, -bound, bound)
    return {
        "waT": u(ks[0], (hidden_size, hidden_size)),   # W^T layout [in, out]
        "wab": u(ks[1], (1, hidden_size)),
        "uaT": u(ks[2], (hidden_size, hidden_size)),
        "uab": u(ks[3], (1, hidden_size)),
        "v_row": u(ks[4], (1, hidden_size)),           # v as a [1, H] row
        "vb": u(ks[5], (1,)),                          # unused by the kernel (softmax shift-invariant)
    }


def reference(decoder_state, encoder_states, params):
    """Pure-JAX reference for the PyTorch forward (including the vb bias)."""
    dec_proj = decoder_state @ params["uaT"] + params["uab"]           # [B, H]
    enc_proj = encoder_states @ params["waT"] + params["wab"]          # [B, T, H]
    scores = (jnp.sum(jnp.tanh(dec_proj[:, None, :] + enc_proj) * params["v_row"],
                      axis=-1) + params["vb"])                         # [B, T]
    attn = jax.nn.softmax(scores, axis=1)
    context = jnp.einsum("bt,bth->bh", attn, encoder_states)
    return context, attn


if __name__ == "__main__":
    B, T, H = 2, 8, 32
    key = jax.random.PRNGKey(0)
    k_dec, k_enc, k_par = jax.random.split(key, 3)

    decoder_state = jax.random.normal(k_dec, (B, H), jnp.float32)
    encoder_states = jax.random.normal(k_enc, (B, T, H), jnp.float32)
    params = init_params(k_par, H)

    # f32 compute keeps tight tolerances; pass compute_dtype=jnp.bfloat16 on
    # v6e/v7x to halve MXU-input VMEM traffic (relax tolerances to ~1e-2 then).
    ctx, attn = bahdanau_attention(decoder_state, encoder_states, params)
    jax.block_until_ready((ctx, attn))

    ctx_ref, attn_ref = reference(decoder_state, encoder_states, params)
    assert jnp.allclose(ctx, ctx_ref, atol=1e-5, rtol=1e-5)
    assert jnp.allclose(attn, attn_ref, atol=1e-5, rtol=1e-5)
    assert jnp.allclose(jnp.sum(attn, axis=1), 1.0, atol=1e-5)

    print("KERNEL_OK")
</pallas_src>

<mosaic_0001>
module attributes {stable_mosaic.version = 11 : i64} {
  func.func @_bahdanau_kernel(%arg0: i32, %arg1: memref<8x32xf32, #tpu.memory_space<vmem>>, %arg2: memref<8x8x32xf32, #tpu.memory_space<vmem>>, %arg3: memref<32x32xf32, #tpu.memory_space<vmem>>, %arg4: memref<32x32xf32, #tpu.memory_space<vmem>>, %arg5: memref<1x32xf32, #tpu.memory_space<vmem>>, %arg6: memref<1x32xf32, #tpu.memory_space<vmem>>, %arg7: memref<8x32xf32, #tpu.memory_space<vmem>>, %arg8: memref<8x8xf32, #tpu.memory_space<vmem>>) attributes {dimension_semantics = [#tpu.dimension_semantics<parallel>], iteration_bounds = array<i64: 1>, scalar_prefetch = 0 : i64, scratch_operands = 0 : i64, tpu.core_type = #tpu.core_type<tc>, window_params = [{transform_indices = @transform_0, window_bounds = array<i64: 8, 32>}, {transform_indices = @transform_1, window_bounds = array<i64: 8, 8, 32>}, {pipeline_mode = #tpu.pipeline_mode<synchronous>, transform_indices = @transform_2, window_bounds = array<i64: 32, 32>}, {pipeline_mode = #tpu.pipeline_mode<synchronous>, transform_indices = @transform_3, window_bounds = array<i64: 32, 32>}, {pipeline_mode = #tpu.pipeline_mode<synchronous>, transform_indices = @transform_4, window_bounds = array<i64: 1, 32>}, {pipeline_mode = #tpu.pipeline_mode<synchronous>, transform_indices = @transform_5, window_bounds = array<i64: 1, 32>}, {transform_indices = @transform_6, window_bounds = array<i64: 8, 32>}, {transform_indices = @transform_7, window_bounds = array<i64: 8, 8>}]} {
    %c0 = arith.constant 0 : index
    %c0_0 = arith.constant 0 : index
    %c0_1 = arith.constant 0 : index
    %0 = vector.load %arg2[%c0, %c0_0, %c0_1] : memref<8x8x32xf32, #tpu.memory_space<vmem>>, vector<8x8x32xf32>
    %c0_2 = arith.constant 0 : index
    %c0_3 = arith.constant 0 : index
    %1 = vector.load %arg1[%c0_2, %c0_3] : memref<8x32xf32, #tpu.memory_space<vmem>>, vector<8x32xf32>
    %2 = vector.shape_cast %0 : vector<8x8x32xf32> to vector<64x32xf32>
    %c0_4 = arith.constant 0 : index
    %c0_5 = arith.constant 0 : index
    %3 = vector.load %arg3[%c0_4, %c0_5] : memref<32x32xf32, #tpu.memory_space<vmem>>, vector<32x32xf32>
    %cst = arith.constant dense<0.000000e+00> : vector<64x32xf32>
    %4 = tpu.matmul %2, %3, %cst {dimension_numbers = #tpu.dot_dimension_numbers<[1], [0], [0], [1], [0, 0, 1, 1], [], []>} : vector<64x32xf32>, vector<32x32xf32>, vector<64x32xf32> -> vector<64x32xf32>
    %c0_6 = arith.constant 0 : index
    %c0_7 = arith.constant 0 : index
    %5 = vector.load %arg4[%c0_6, %c0_7] : memref<32x32xf32, #tpu.memory_space<vmem>>, vector<32x32xf32>
    %cst_8 = arith.constant dense<0.000000e+00> : vector<8x32xf32>
    %6 = tpu.matmul %1, %5, %cst_8 {dimension_numbers = #tpu.dot_dimension_numbers<[1], [0], [0], [1], [0, 0, 1, 1], [], []>} : vector<8x32xf32>, vector<32x32xf32>, vector<8x32xf32> -> vector<8x32xf32>
    %c0_9 = arith.constant 0 : index
    %c0_10 = arith.constant 0 : index
    %7 = vector.load %arg5[%c0_9, %c0_10] : memref<1x32xf32, #tpu.memory_space<vmem>>, vector<1x32xf32>
    %8 = vector.broadcast %7 : vector<1x32xf32> to vector<8x32xf32>
    %9 = arith.addf %6, %8 : vector<8x32xf32>
    %10 = vector.shape_cast %4 : vector<64x32xf32> to vector<8x8x32xf32>
    %11 = vector.shape_cast %9 : vector<8x32xf32> to vector<8x1x32xf32>
    %12 = vector.broadcast %11 : vector<8x1x32xf32> to vector<8x8x32xf32>
    %13 = arith.addf %10, %12 : vector<8x8x32xf32>
    %14 = math.tanh %13 : vector<8x8x32xf32>
    %c0_11 = arith.constant 0 : index
    %c0_12 = arith.constant 0 : index
    %15 = vector.load %arg6[%c0_11, %c0_12] : memref<1x32xf32, #tpu.memory_space<vmem>>, vector<1x32xf32>
    %16 = vector.shape_cast %15 : vector<1x32xf32> to vector<1x1x32xf32>
    %17 = vector.broadcast %16 : vector<1x1x32xf32> to vector<8x8x32xf32>
    %18 = arith.mulf %14, %17 : vector<8x8x32xf32>
    %cst_13 = arith.constant dense<0.000000e+00> : vector<8x8xf32>
    %19 = vector.multi_reduction <add>, %18, %cst_13 [2] : vector<8x8x32xf32> to vector<8x8xf32>
    %cst_14 = arith.constant dense<0xFF800000> : vector<8xf32>
    %20 = vector.multi_reduction <maximumf>, %19, %cst_14 [1] : vector<8x8xf32> to vector<8xf32>
    %21 = vector.shape_cast %20 : vector<8xf32> to vector<8x1xf32>
    %22 = vector.broadcast %21 : vector<8x1xf32> to vector<8x8xf32>
    %23 = arith.subf %19, %22 : vector<8x8xf32>
    %24 = math.exp %23 : vector<8x8xf32>
    %cst_15 = arith.constant dense<0.000000e+00> : vector<8xf32>
    %25 = vector.multi_reduction <add>, %24, %cst_15 [1] : vector<8x8xf32> to vector<8xf32>
    %26 = vector.shape_cast %25 : vector<8xf32> to vector<8x1xf32>
    %27 = vector.broadcast %26 : vector<8x1xf32> to vector<8x8xf32>
    %28 = arith.divf %24, %27 : vector<8x8xf32>
    %29 = vector.shape_cast %28 : vector<8x8xf32> to vector<8x1x8xf32>
    "tpu.trace_start"() <{level = 10 : i32, message = "bqt,bth->bqh"}> : () -> ()
    %cst_16 = arith.constant dense<0.000000e+00> : vector<8x1x32xf32>
    %30 = tpu.matmul %29, %0, %cst_16 {dimension_numbers = #tpu.dot_dimension_numbers<[2], [1], [1], [2], [0, 0, 0, 1, 1, 2], [0], [0]>} : vector<8x1x8xf32>, vector<8x8x32xf32>, vector<8x1x32xf32> -> vector<8x1x32xf32>
    "tpu.trace_stop"() : () -> ()
    %31 = vector.shape_cast %30 : vector<8x1x32xf32> to vector<8x32xf32>
    %c0_17 = arith.constant 0 : index
    %c0_18 = arith.constant 0 : index
    %32 = vector.load %arg7[%c0_17, %c0_18] : memref<8x32xf32, #tpu.memory_space<vmem>>, vector<8x32xf32>
    tpu.vector_store %arg7[%c0_17, %c0_18], %31 {strides = array<i32>} : memref<8x32xf32, #tpu.memory_space<vmem>>, vector<8x32xf32>,
    %c0_19 = arith.constant 0 : index
    %c0_20 = arith.constant 0 : index
    %33 = vector.load %arg8[%c0_19, %c0_20] : memref<8x8xf32, #tpu.memory_space<vmem>>, vector<8x8xf32>
    tpu.vector_store %arg8[%c0_19, %c0_20], %28 {strides = array<i32>} : memref<8x8xf32, #tpu.memory_space<vmem>>, vector<8x8xf32>,
    return
  }
  func.func @transform_0(%arg0: i32) -> (i32, i32) {
    %c0_i32 = arith.constant 0 : i32
    %c0_i32_0 = arith.constant 0 : i32
    return %arg0, %c0_i32 : i32, i32
  }
  func.func @transform_1(%arg0: i32) -> (i32, i32, i32) {
    %c0_i32 = arith.constant 0 : i32
    %c0_i32_0 = arith.constant 0 : i32
    %c0_i32_1 = arith.constant 0 : i32
    return %arg0, %c0_i32, %c0_i32_0 : i32, i32, i32
  }
  func.func @transform_2(%arg0: i32) -> (i32, i32) {
    %c0_i32 = arith.constant 0 : i32
    %c0_i32_0 = arith.constant 0 : i32
    %c0_i32_1 = arith.constant 0 : i32
    return %c0_i32, %c0_i32_0 : i32, i32
  }
  func.func @transform_3(%arg0: i32) -> (i32, i32) {
    %c0_i32 = arith.constant 0 : i32
    %c0_i32_0 = arith.constant 0 : i32
    %c0_i32_1 = arith.constant 0 : i32
    return %c0_i32, %c0_i32_0 : i32, i32
  }
  func.func @transform_4(%arg0: i32) -> (i32, i32) {
    %c0_i32 = arith.constant 0 : i32
    %c0_i32_0 = arith.constant 0 : i32
    %c0_i32_1 = arith.constant 0 : i32
    return %c0_i32, %c0_i32_0 : i32, i32
  }
  func.func @transform_5(%arg0: i32) -> (i32, i32) {
    %c0_i32 = arith.constant 0 : i32
    %c0_i32_0 = arith.constant 0 : i32
    %c0_i32_1 = arith.constant 0 : i32
    return %c0_i32, %c0_i32_0 : i32, i32
  }
  func.func @transform_6(%arg0: i32) -> (i32, i32) {
    %c0_i32 = arith.constant 0 : i32
    %c0_i32_0 = arith.constant 0 : i32
    return %arg0, %c0_i32 : i32, i32
  }
  func.func @transform_7(%arg0: i32) -> (i32, i32) {
    %c0_i32 = arith.constant 0 : i32
    %c0_i32_0 = arith.constant 0 : i32
    return %arg0, %c0_i32 : i32, i32
  }
}

</mosaic_0001>

<bundles_post_ra>
// kernel: tpu_custom_call.1
= control target key start
LH: loop header
LB: loop body
LE: loop exit
PB: predicated region body
PF: predicated region fallthrough
CT: control target
= control target key end

     0   :  { %13 = vsyncpa [#allocation3], 0  ;;  %s1367_s0 = inlined_call_operand.hbm [shape: f32[8,32], index: 0, kind: input, shape index: {}]   ;;  %s1368_s1 = inlined_call_operand.hbm [shape: f32[8,8,32], index: 1, kind: input, shape index: {}]   ;;  %s1369_s2 = inlined_call_operand.hbm [shape: f32[32,32], index: 2, kind: input, shape index: {}]   ;;  %s1370_s3 = inlined_call_operand.hbm [shape: f32[32,32], index: 3, kind: input, shape index: {}]   ;;  %s1371_s4 = inlined_call_operand.vmem [shape: f32[1,32], index: 4, kind: input, shape index: {}]   ;;  %s1372_s5 = inlined_call_operand.vmem [shape: f32[1,32], index: 5, kind: input, shape index: {}]   ;;  %s1373_s6 = inlined_call_operand.hbm [shape: f32[8,32], index: 6, kind: output, shape index: {0}]   ;;  %s1374_s7 = inlined_call_operand.hbm [shape: f32[8,8], index: 7, kind: output, shape index: {1}]  }
   0x1   :  { %14 = vsyncpa [#allocation6], 0 }
   0x2   :  { %15 = vsyncpa [#allocation9], 0 }
   0x3   :  { %16 = vsyncpa [#allocation4], 0  ;;  %s33_s26 = sshll.u32 %s1368_s1, 4  ;;  %s34_s26 = int_to_ptr.hbm [resolvable:$true] %s33_s26 }
   0x4   :  { %17 = vsyncpa [#allocation12], 0  ;;  %s1069_s27 = smov [#allocation5]   ;;  %s23_s8 = sshll.u32 %s1367_s0, 4  ;;  %s24_s8 = int_to_ptr.hbm [resolvable:$true] %s23_s8 }
   0x5   :  { %s35_s28 = sshll.u32 %s1069_s27, 4  ;;  %s1070_s9 = smov 128   ;;  %s36_s28 = int_to_ptr.vmem [resolvable:$true] %s35_s28 }
   0x6   :  { %s1071_s10 = smov 8   ;;  %s1072_s11 = smov [#allocation2]  }
   0x7   :  { %41 = dma.hbm_to_vmem [thread:$0]  %s34_s26, 1024, %s36_s28, [#allocation6], %s1070_s9, %s1070_s9, %s1071_s10  }
   0x8   :  { %s25_s12 = sshll.u32 %s1072_s11, 4  ;;  %s46_s15 = sshll.u32 %s1369_s2, 4  ;;  %s26_s12 = int_to_ptr.vmem [resolvable:$true] %s25_s12  ;;  %s47_s15 = int_to_ptr.hbm [resolvable:$true] %s46_s15 }
   0x9   :  { %28 = dma.hbm_to_vmem [thread:$0]  %s24_s8, 128, %s26_s12, [#allocation3]  }
   0xa   :  { %s59_s17 = sshll.u32 %s1370_s3, 4  ;;  %s1073_s18 = smov [#allocation7]   ;;  %s60_s17 = int_to_ptr.hbm [resolvable:$true] %s59_s17 }
   0xb   :  { %s48_s19 = sshll.u32 %s1073_s18, 4  ;;  %s1074_s0 = smov [#allocation8]   ;;  %s49_s19 = int_to_ptr.vmem [resolvable:$true] %s48_s19 }
   0xc   :  { %54 = dma.hbm_to_vmem [thread:$0]  %s47_s15, 512, %s49_s19, [#allocation6], %s1070_s9, %s1070_s9, %s1071_s10  }
   0xd   :  { %s61_s20 = sshll.u32 %s1074_s0, 4  ;;  %s62_s20 = int_to_ptr.vmem [resolvable:$true] %s61_s20 }
   0xe   :  { %67 = dma.hbm_to_vmem [thread:$0]  %s60_s17, 512, %s62_s20, [#allocation9], %s1070_s9, %s1070_s9, %s1071_s10  }
   0xf   :  { %1059 = dma.done.wait [#allocation3], 128  }
  0x10   :  { %1060 = vsyncadd [#allocation3], 4294967168 }
  0x11   :  { %1061 = dma.done.wait [#allocation6], 1536  }
  0x12   :  { %1062 = vsyncadd [#allocation6], 4294965760 }
  0x13   :  { %1063 = dma.done.wait [#allocation9], 512  }
  0x14   :  { %1064 = vsyncadd [#allocation9], 4294966784  ;;  %v100_v0 = vld [vmem:[#allocation7 + $0x18] sm:$0xff]  ;;  %v99_v1 = vld [vmem:[#allocation7 + $0x10] sm:$0xff]  ;;  %vm1375_vm0 = vcmask 261120   ;;  %vm292_vm1 = vcmask 1041409  }
  0x15   :  { %138 = vmatpush.msra.mxu0 %v100_v0  ;;  %841 = vmatpush.msra.mxu1 %v100_v0  ;;  %v98_v2 = vld [vmem:[#allocation7 + $0x8] sm:$0xff]  ;;  %v97_v3 = vld [vmem:[#allocation7] sm:$0xff]  ;;  %v170_v6 = vld [vmem:[#allocation8 + $0x18] sm:$0xff]  ;;  %vm294_vm2 = vcmask 1042434   ;;  %vm296_vm3 = vcmask 1043459   ;;  %vm298_vm4 = vcmask 1044484  }
  0x16   :  { %843 = vmatpush.msra.mxu3 %v100_v0  ;;  %842 = vmatpush.msra.mxu2 %v100_v0  ;;  %v88_v4 = vld [vmem:[#allocation5] sm:$0xff]  ;;  %v1130_v7 = vld [vmem:[#allocation5 + $0x30] sm:$0xff]  ;;  %v1134_v9 = vld [vmem:[#allocation5 + $0x28] sm:$0xff]  ;;  %vm300_vm5 = vcmask 1045509   ;;  %vm1377_vm6 = vcmask 1046534   ;;  %vm1376_vm7 = vcmask 1047559  }
  0x17   :  { %139 = vmatpush.msra.mxu0 %v99_v1  ;;  %844 = vmatpush.msra.mxu1 %v99_v1  ;;  %v92_v5 = vld [vmem:[#allocation5 + $0x20] sm:$0xff]  ;;  %v169_v8 = vld [vmem:[#allocation8 + $0x10] sm:$0xff]  ;;  %v168_v10 = vld [vmem:[#allocation8 + $0x8] sm:$0xff]  ;;  %vm307_vm8 = vcmask 64512   ;;  %s807_s25 = sshll.u32 %s1374_s7, 4  ;;  %s1077_s7 = smov [#allocation10]   ;;  %s808_s25 = int_to_ptr.hbm [resolvable:$true] %s807_s25 }
  0x18   :  { %846 = vmatpush.msra.mxu3 %v99_v1  ;;  %845 = vmatpush.msra.mxu2 %v99_v1  ;;  %v89_v11 = vld [vmem:[#allocation5 + $0x8] sm:$0xff]  ;;  %v167_v12 = vld [vmem:[#allocation8] sm:$0xff]  ;;  %v90_v13 = vld [vmem:[#allocation5 + $0x10] sm:$0xff]  ;;  %s794_s26 = sshll.u32 %s1077_s7, 4  ;;  %s796_s29 = sshll.u32 %s1373_s6, 4  ;;  %s795_s26 = int_to_ptr.vmem [resolvable:$true] %s794_s26  ;;  %s797_s29 = int_to_ptr.hbm [resolvable:$true] %s796_s29 }
  0x19   :  { %140 = vmatpush.msra.mxu0 %v98_v2  ;;  %847 = vmatpush.msra.mxu1 %v98_v2  ;;  %v96_v14 = vld [vmem:[#allocation2] sm:$0xff] }
  0x1a   :  { %849 = vmatpush.msra.mxu3 %v98_v2  ;;  %848 = vmatpush.msra.mxu2 %v98_v2  ;;  %v91_v15 = vld [vmem:[#allocation5 + $0x18] sm:$0xff] }
  0x1b   :  { %141 = vmatpush.msra.mxu0 %v97_v3  ;;  %850 = vmatpush.msra.mxu1 %v97_v3  ;;  %v95_v16 = vld [vmem:[#allocation5 + $0x38] sm:$0xff] }
  0x1c   :  { %824 = vmatmul.msk.f32.vlgmr.msra.gmra.mxu0 %vm1375_vm0, %v88_v4  ;;  %828 = vmatmul.msk.f32.vlgmr.msra.gmra.mxu1 %vm1375_vm0, %v92_v5  ;;  %v865_v19 = vld [vmem:[%s1371_s4] ss:$0 sm:$0xff] }
  0x1d   :  { %852 = vmatpush.msra.mxu3 %v97_v3  ;;  %190 = vmatpush.msrb.mxu1 %v170_v6  ;;  %v866_v42 = vld [vmem:[%s1372_s5] ss:$0 sm:$0xff]  ;;  %s1076_s5 = smov [#allocation11]  }
  0x1e   :  { %830 = vmatmul.msk.f32.vlgmr.msra.gmra.mxu3 %vm1375_vm0, %v1130_v7  ;;  %851 = vmatpush.msra.mxu2 %v97_v3  ;;  %s805_s22 = sshll.u32 %s1076_s5, 4  ;;  %s806_s22 = int_to_ptr.vmem [resolvable:$true] %s805_s22 }
  0x1f   :  { %191 = vmatpush.msrb.mxu1 %v169_v8  ;;  %829 = vmatmul.msk.f32.vlgmr.msra.gmra.mxu2 %vm1375_vm0, %v1134_v9 }
  0x20   :  { %589 = vmatpush.msrb.mxu3 %v89_v11  ;;  %562 = vmatpush.msrb.mxu2 %v88_v4 }
  0x21   :  { %192 = vmatpush.msrb.mxu1 %v168_v10 }
  0x22   :  { %616 = vmatpush.msra.mxu2 %v90_v13  ;;  %643 = vmatpush.msra.mxu3 %v91_v15 }
  0x23   :  { %193 = vmatpush.msrb.mxu1 %v167_v12 }
  0x24   :  { %825 = vmatmul.msk.f32.gmra.mxu0 %vm1375_vm0, %v89_v11  ;;  %832 = vmatmul.msk.f32.vlgmr.msrb.gmra.mxu1 %vm1375_vm0, %v96_v14 }
  0x25   :  { %670 = vmatpush.msra.mxu1 %v92_v5 }
  0x26   :  { %831 = vmatmul.msk.f32.gmra.mxu3 %vm1375_vm0, %v95_v16 }
  0x27   :  { %751 = vmatpush.msrb.mxu1 %v95_v16 }
  0x2c   :  { %826 = vmatmul.msk.f32.gmra.mxu0 %vm1375_vm0, %v90_v13 }
  0x34   :  { %827 = vmatmul.msk.f32.gmra.mxu0 %vm1375_vm0, %v91_v15  ;;  %v282_v15 = vlaneseq }
  0x99   :  { %v143_v17 = vpop.f32.mrf.mxu0  ;;  %v155_v18 = vpop.f32.mrf.mxu1 }
  0xa1   :  { %v146_v20 = vpop.f32.mrf.mxu0  ;;  %v195_v21 = vpop.f32.mrf.mxu1 }
  0xa2   :  { %v196_v22 = vadd.f32 %v865_v19, %v195_v21  ;;  %v161_v28 = vpop.f32.mrf.mxu3  ;;  %v158_v38 = vpop.f32.mrf.mxu2 }
  0xa4   :  { %v200_v23 = vrot.slane %v196_v22, 2  ;;  %v203_v24 = vrot.slane %v196_v22, 5  ;;  %v206_v25 = vperm.slane %v196_v22, 0  ;;  %v202_v26 = vrot.slane %v196_v22, 4 }
  0xa5   :  { %v199_v27 = vrot.slane %v196_v22, 1  ;;  %v204_v34 = vrot.slane %v196_v22, 6  ;;  %v205_v40 = vrot.slane %v196_v22, 7  ;;  %v201_v41 = vrot.slane %v196_v22, 3 }
  0xa6   :  { %v208_v29 = vperm.slane %v200_v23, 0  ;;  %v222_v30 = vadd.f32 %v206_v25, %v143_v17  ;;  %v210_v31 = vperm.slane %v202_v26, 0  ;;  %v211_v36 = vperm.slane %v203_v24, 0 }
  0xa7   :  { %v207_v32 = vperm.slane %v199_v27, 0  ;;  %v212_v44 = vperm.slane %v204_v34, 0  ;;  %v213_v46 = vperm.slane %v205_v40, 0  ;;  %v209_v47 = vperm.slane %v201_v41, 0 }
  0xa8   :  { %867 = vtanh.f32 %v222_v30  ;;  %v226_v37 = vadd.f32 %v210_v31, %v155_v18  ;;  %v227_v43 = vadd.f32 %v211_v36, %v158_v38  ;;  %v1159_v18 = vand.u32 127, %v282_v15 }
  0xa9   :  { %v149_v33 = vpop.f32.mrf.mxu0  ;;  %v223_v39 = vadd.f32 %v207_v32, %v146_v20  ;;  %v228_v53 = vadd.f32 %v212_v44, %v161_v28  ;;  %v1075_v40 = vmov 0  }
  0xaa   :  { %v224_v35 = vadd.f32 %v208_v29, %v149_v33  ;;  %v164_v48 = vpop.f32.mrf.mxu3  ;;  %864 = vset.pattern.permute.xlu2 %v1075_v40  ;;  %863 = vset.pattern.permute.xlu1 %v1075_v40 }
  0xab   :  { %v229_v57 = vadd.f32 %v213_v46, %v164_v48  ;;  %862 = vset.pattern.permute.xlu0 %v1075_v40 }
  0xac   :  { %869 = vtanh.f32 %v224_v35 }
  0xad   :  { %871 = vtanh.f32 %v226_v37 }
  0xae   :  { %873 = vtanh.f32 %v223_v39  ;;  %v868_v45 = vpop.eup %867 }
  0xaf   :  { %v242_v50 = vmul.f32 %v868_v45, %v866_v42  ;;  %875 = vtanh.f32 %v227_v43 }
  0xb1   :  { %v152_v49 = vpop.f32.mrf.mxu0  ;;  %v250_v54 = vsel %vm1375_vm0, %v242_v50, 0.0 }
  0xb2   :  { %v870_v51 = vpop.eup %869  ;;  %v225_v52 = vadd.f32 %v209_v47, %v152_v49  ;;  %251 = vadd.xlane.f32.xlu0 %v250_v54 }
  0xb3   :  { %v244_v55 = vmul.f32 %v870_v51, %v866_v42  ;;  %v872_v56 = vpop.eup %871 }
  0xb4   :  { %877 = vtanh.f32 %v225_v52  ;;  %v874_v58 = vpop.eup %873  ;;  %v246_v59 = vmul.f32 %v872_v56, %v866_v42 }
  0xb5   :  { %v256_v60 = vsel %vm1375_vm0, %v244_v55, 0.0  ;;  %879 = vtanh.f32 %v228_v53  ;;  %v243_v62 = vmul.f32 %v874_v58, %v866_v42  ;;  %v876_v63 = vpop.eup %875 }
  0xb6   :  { %257 = vadd.xlane.f32.xlu1 %v256_v60  ;;  %v262_v61 = vsel %vm1375_vm0, %v246_v59, 0.0  ;;  %881 = vtanh.f32 %v229_v57  ;;  %v247_v2 = vmul.f32 %v876_v63, %v866_v42 }
  0xb7   :  { %263 = vadd.xlane.f32.xlu2 %v262_v61  ;;  %v253_v1 = vsel %vm1375_vm0, %v243_v62, 0.0 }
  0xb8   :  { %v265_v8 = vsel %vm1375_vm0, %v247_v2, 0.0 }
  0xba   :  { %v878_v0 = vpop.eup %877  ;;  %254 = vadd.xlane.f32.xlu0 %v253_v1 }
  0xbb   :  { %v245_v3 = vmul.f32 %v878_v0, %v866_v42  ;;  %v880_v4 = vpop.eup %879 }
  0xbc   :  { %v882_v6 = vpop.eup %881  ;;  %v248_v10 = vmul.f32 %v880_v4, %v866_v42 }
  0xbd   :  { %v259_v5 = vsel %vm1375_vm0, %v245_v3, 0.0  ;;  %v249_v11 = vmul.f32 %v882_v6, %v866_v42 }
  0xbe   :  { %260 = vadd.xlane.f32.xlu1 %v259_v5  ;;  %v268_v12 = vsel %vm1375_vm0, %v248_v10, 0.0 }
  0xbf   :  { %266 = vadd.xlane.f32.xlu2 %v265_v8  ;;  %v271_v13 = vsel %vm1375_vm0, %v249_v11, 0.0 }
  0xc2   :  { %269 = vadd.xlane.f32.xlu0 %v268_v12 }
  0xc6   :  { %272 = vadd.xlane.f32.xlu1 %v271_v13 }
 0x125   :  { %v252_v14 = vpop.xlane.xlu0 %251 }
 0x126   :  { %v284_v20 = vperm.slane %v252_v14, %v1159_v18 }
 0x129   :  { %v258_v16 = vpop.xlane.xlu1 %257 }
 0x12a   :  { %v264_v17 = vpop.xlane.xlu2 %263  ;;  %v286_v22 = vperm.slane %v258_v16, %v1159_v18 }
 0x12b   :  { %v288_v26 = vperm.slane %v264_v17, %v1159_v18 }
 0x12d   :  { %v255_v19 = vpop.xlane.xlu0 %254 }
 0x12e   :  { %v285_v21 = vperm.slane %v255_v19, %v1159_v18 }
 0x130   :  { %v293_v24 = vsel %vm292_vm1, %v285_v21, %v284_v20 }
 0x131   :  { %v261_v23 = vpop.xlane.xlu1 %260  ;;  %v295_v28 = vsel %vm294_vm2, %v286_v22, %v293_v24 }
 0x132   :  { %v287_v25 = vperm.slane %v261_v23, %v1159_v18  ;;  %v267_v27 = vpop.xlane.xlu2 %266 }
 0x133   :  { %v289_v31 = vperm.slane %v267_v27, %v1159_v18 }
 0x134   :  { %v297_v29 = vsel %vm296_vm3, %v287_v25, %v295_v28 }
 0x135   :  { %v299_v30 = vsel %vm298_vm4, %v288_v26, %v297_v29  ;;  %v270_v32 = vpop.xlane.xlu0 %269 }
 0x136   :  { %v290_v33 = vperm.slane %v270_v32, %v1159_v18  ;;  %v301_v34 = vsel %vm300_vm5, %v289_v31, %v299_v30 }
 0x138   :  { %v303_v37 = vsel %vm1377_vm6, %v290_v33, %v301_v34 }
 0x139   :  { %v273_v35 = vpop.xlane.xlu1 %272 }
 0x13a   :  { %v291_v36 = vperm.slane %v273_v35, %v1159_v18 }
 0x13c   :  { %v305_v38 = vsel %vm1376_vm7, %v291_v36, %v303_v37 }
 0x13d   :  { %v308_v39 = vsel %vm307_vm8, %v305_v38, -inf }
 0x13e   :  { %309 = vmax.xlane.f32.xlu2 %v308_v39 }
 0x1b1   :  { %v310_v41 = vpop.xlane.xlu2 %309 }
 0x1b2   :  { %v314_v42 = vperm.slane %v310_v41, 2  ;;  %v313_v43 = vperm.slane %v310_v41, 1  ;;  %v312_v44 = vperm.slane %v310_v41, 0  ;;  %v315_v48 = vperm.slane %v310_v41, 3 }
 0x1b3   :  { %v316_v49 = vperm.slane %v310_v41, 4  ;;  %v319_v50 = vperm.slane %v310_v41, 7  ;;  %v317_v58 = vperm.slane %v310_v41, 5  ;;  %v318_v60 = vperm.slane %v310_v41, 6 }
 0x1b4   :  { %v330_v45 = vsub.f32 %v258_v16, %v314_v42  ;;  %v329_v46 = vsub.f32 %v255_v19, %v313_v43  ;;  %v328_v47 = vsub.f32 %v252_v14, %v312_v44  ;;  %v331_v54 = vsub.f32 %v261_v23, %v315_v48 }
 0x1b5   :  { %v332_v55 = vsub.f32 %v264_v17, %v316_v49  ;;  %v335_v56 = vsub.f32 %v273_v35, %v319_v50  ;;  %v333_v1 = vsub.f32 %v267_v27, %v317_v58  ;;  %v334_v2 = vsub.f32 %v270_v32, %v318_v60 }
 0x1b6   :  { %v340_v51 = vmul.f32 1.442695, %v330_v45  ;;  %v338_v52 = vmul.f32 1.442695, %v329_v46  ;;  %v336_v53 = vmul.f32 1.442695, %v328_v47 }
 0x1b7   :  { %v342_v57 = vmul.f32 1.442695, %v331_v54  ;;  %v344_v59 = vmul.f32 1.442695, %v332_v55  ;;  %v350_v62 = vmul.f32 1.442695, %v335_v56 }
 0x1b8   :  { %883 = vpow2.f32 %v340_v51  ;;  %v346_v3 = vmul.f32 1.442695, %v333_v1  ;;  %v348_v4 = vmul.f32 1.442695, %v334_v2 }
 0x1b9   :  { %885 = vpow2.f32 %v338_v52 }
 0x1ba   :  { %887 = vpow2.f32 %v336_v53 }
 0x1bb   :  { %889 = vpow2.f32 %v342_v57 }
 0x1bc   :  { %891 = vpow2.f32 %v344_v59 }
 0x1bd   :  { %893 = vpow2.f32 %v350_v62 }
 0x1be   :  { %v1177_v61 = vpop.eup %883  ;;  %895 = vpow2.f32 %v346_v3 }
 0x1bf   :  { %v1179_v63 = vpop.eup %885  ;;  %367 = vperm.xlu2 %864, %v1177_v61   ;;  %897 = vpow2.f32 %v348_v4 }
 0x1c0   :  { %v1182_v0 = vpop.eup %887  ;;  %364 = vperm.xlu1 %863, %v1179_v63  }
 0x1c1   :  { %361 = vperm.xlu0 %862, %v1182_v0   ;;  %v1186_v5 = vpop.eup %889 }
 0x1c2   :  { %v1188_v6 = vpop.eup %891 }
 0x1c3   :  { %v1191_v8 = vpop.eup %893 }
 0x1c4   :  { %v1195_v10 = vpop.eup %895 }
 0x1c5   :  { %v1197_v11 = vpop.eup %897 }
 0x1c7   :  { %370 = vperm.xlu2 %864, %v1186_v5  }
 0x1c8   :  { %373 = vperm.xlu1 %863, %v1188_v6  }
 0x1c9   :  { %382 = vperm.xlu0 %862, %v1191_v8  }
 0x1cf   :  { %376 = vperm.xlu2 %864, %v1195_v10  }
 0x1d0   :  { %379 = vperm.xlu1 %863, %v1197_v11  }
 0x219   :  { %v368_v12 = vpop.permute.xlu2 %367 }
 0x21a   :  { %v386_v21 = vperm.slane %v368_v12, %v1159_v18 }
 0x221   :  { %v371_v15 = vpop.permute.xlu2 %370 }
 0x222   :  { %v387_v24 = vperm.slane %v371_v15, %v1159_v18 }
 0x229   :  { %v377_v25 = vpop.permute.xlu2 %376 }
 0x22a   :  { %v389_v29 = vperm.slane %v377_v25, %v1159_v18 }
 0x232   :  { %v365_v13 = vpop.permute.xlu1 %364 }
 0x233   :  { %v362_v14 = vpop.permute.xlu0 %361  ;;  %v385_v16 = vperm.slane %v365_v13, %v1159_v18 }
 0x234   :  { %v384_v17 = vperm.slane %v362_v14, %v1159_v18 }
 0x236   :  { %v392_v19 = vsel %vm292_vm1, %v385_v16, %v384_v17 }
 0x237   :  { %v393_v22 = vsel %vm294_vm2, %v386_v21, %v392_v19 }
 0x238   :  { %v394_v26 = vsel %vm296_vm3, %v387_v24, %v393_v22 }
 0x23a   :  { %v374_v20 = vpop.permute.xlu1 %373 }
 0x23b   :  { %v388_v23 = vperm.slane %v374_v20, %v1159_v18  ;;  %v383_v28 = vpop.permute.xlu0 %382 }
 0x23c   :  { %v391_v32 = vperm.slane %v383_v28, %v1159_v18 }
 0x23d   :  { %v395_v27 = vsel %vm298_vm4, %v388_v23, %v394_v26 }
 0x23e   :  { %v396_v33 = vsel %vm300_vm5, %v389_v29, %v395_v27 }
 0x242   :  { %v380_v30 = vpop.permute.xlu1 %379 }
 0x243   :  { %v390_v31 = vperm.slane %v380_v30, %v1159_v18 }
 0x245   :  { %v397_v34 = vsel %vm1377_vm6, %v390_v31, %v396_v33 }
 0x246   :  { %v398_v35 = vsel %vm1376_vm7, %v391_v32, %v397_v34 }
 0x247   :  { %v400_v36 = vsel %vm307_vm8, %v398_v35, 0.0 }
 0x248   :  { %401 = vadd.xlane.f32.xlu2 %v400_v36 }
 0x2bb   :  { %v402_v37 = vpop.xlane.xlu2 %401 }
 0x2bc   :  { %v404_v38 = vperm.slane %v402_v37, 0  ;;  %v405_v39 = vperm.slane %v402_v37, 1  ;;  %v1217_v40 = vperm.slane %v402_v37, 2  ;;  %v1219_v41 = vperm.slane %v402_v37, 3 }
 0x2bd   :  { %v1221_v42 = vperm.slane %v402_v37, 4  ;;  %v1223_v43 = vperm.slane %v402_v37, 5  ;;  %v1229_v48 = vperm.slane %v402_v37, 7  ;;  %v1231_v51 = vperm.slane %v402_v37, 6 }
 0x2be   :  { %899 = vrcp.f32 %v404_v38  ;;  %v444_v44 = vand.u32 2147483647, %v405_v39  ;;  %v446_v45 = vand.u32 2147483648, %v405_v39  ;;  %v429_v46 = vand.u32 2147483647, %v404_v38 }
 0x2bf   :  { %901 = vrcp.f32 %v405_v39  ;;  %v431_v49 = vand.u32 2147483648, %v404_v38  ;;  %vm440_vm9 = vweird.f32 %v405_v39  ;;  %vm425_vm11 = vweird.f32 %v404_v38 }
 0x2c0   :  { %903 = vrcp.f32 %v1217_v40  ;;  %vm1235_vm10 = vcmp.eq.f32.partialorder %v444_v44, 8.507059e+37  ;;  %v447_v57 = vor.u32 1.1754944e-38, %v446_v45  ;;  %vm1241_vm12 = vcmp.eq.f32.partialorder %v429_v46, 8.507059e+37 }
 0x2c1   :  { %905 = vrcp.f32 %v1219_v41  ;;  %v432_v2 = vor.u32 1.1754944e-38, %v431_v49  ;;  %v476_v20 = vand.u32 2147483648, %v1219_v41  ;;  %v461_v22 = vand.u32 2147483648, %v1217_v40 }
 0x2c2   :  { %907 = vrcp.f32 %v1221_v42  ;;  %v459_v35 = vand.u32 2147483647, %v1217_v40  ;;  %v474_v37 = vand.u32 2147483647, %v1219_v41 }
 0x2c3   :  { %909 = vrcp.f32 %v1223_v43  ;;  %v477_v45 = vor.u32 1.1754944e-38, %v476_v20 }
 0x2c4   :  { %v900_v47 = vpop.eup %899  ;;  %911 = vrcp.f32 %v1229_v48 }
 0x2c5   :  { %v902_v50 = vpop.eup %901  ;;  %v421_v52 = vmul.f32 %v900_v47, %v404_v38  ;;  %vm426_vm13 = vweird.f32 %v900_v47  ;;  %913 = vrcp.f32 %v1231_v51 }
 0x2c6   :  { %v1233_v53 = vpop.eup %903  ;;  %v436_v54 = vmul.f32 %v902_v50, %v405_v39  ;;  %vm441_vm14 = vweird.f32 %v902_v50  ;;  %vm427_vm15 = vmor %vm425_vm11, %vm426_vm13  ;;  %vm470_vm11 = vweird.f32 %v1219_v41 }
 0x2c7   :  { %v1239_v56 = vpop.eup %905  ;;  %v422_v58 = vsub.f32 1.0, %v421_v52  ;;  %v451_v60 = vmul.f32 %v1233_v53, %v1217_v40  ;;  %vm456_vm0 = vweird.f32 %v1233_v53  ;;  %vm442_vm7 = vmor %vm440_vm9, %vm441_vm14  ;;  %vm455_vm9 = vweird.f32 %v1217_v40 }
 0x2c8   :  { %v1247_v62 = vpop.eup %907  ;;  %v437_v1 = vsub.f32 1.0, %v436_v54  ;;  %v466_v3 = vmul.f32 %v1239_v56, %v1219_v41  ;;  %vm471_vm6 = vweird.f32 %v1239_v56  ;;  %v462_v40 = vor.u32 1.1754944e-38, %v461_v22 }
 0x2c9   :  { %v1252_v4 = vpop.eup %909  ;;  %v423_v12 = vmul.f32 %v900_v47, %v422_v58  ;;  %v452_v13 = vsub.f32 1.0, %v451_v60  ;;  %v481_v14 = vmul.f32 %v1247_v62, %v1221_v42  ;;  %v491_v54 = vand.u32 2147483648, %v1221_v42 }
 0x2ca   :  { %v438_v15 = vmul.f32 %v902_v50, %v437_v1  ;;  %v467_v16 = vsub.f32 1.0, %v466_v3  ;;  %v496_v17 = vmul.f32 %v1252_v4, %v1223_v43  ;;  %v1268_v28 = vpop.eup %911  ;;  %vm501_vm13 = vweird.f32 %v1252_v4 }
 0x2cb   :  { %v424_v19 = vadd.f32 %v900_v47, %v423_v12  ;;  %v453_v21 = vmul.f32 %v1233_v53, %v452_v13  ;;  %v482_v27 = vsub.f32 1.0, %v481_v14  ;;  %v1287_v39 = vpop.eup %913  ;;  %v526_v41 = vmul.f32 %v1268_v28, %v1229_v48 }
 0x2cc   :  { %v439_v23 = vadd.f32 %v902_v50, %v438_v15  ;;  %v468_v24 = vmul.f32 %v1239_v56, %v467_v16  ;;  %v497_v32 = vsub.f32 1.0, %v496_v17  ;;  %v511_v52 = vmul.f32 %v1287_v39, %v1231_v51 }
 0x2cd   :  { %v428_v25 = vsel %vm427_vm15, %v900_v47, %v424_v19  ;;  %v454_v26 = vadd.f32 %v1233_v53, %v453_v21  ;;  %v506_v47 = vand.u32 2147483648, %v1223_v43  ;;  %v527_v55 = vsub.f32 1.0, %v526_v41 }
 0x2ce   :  { %v443_v29 = vsel %vm442_vm7, %v902_v50, %v439_v23  ;;  %v433_v30 = vsel %vm1241_vm12, %v432_v2, %v428_v25  ;;  %v469_v31 = vadd.f32 %v1239_v56, %v468_v24  ;;  %vm457_vm7 = vmor %vm455_vm9, %vm456_vm0  ;;  %v498_v44 = vmul.f32 %v1252_v4, %v497_v32 }
 0x2cf   :  { %v448_v33 = vsel %vm1235_vm10, %v447_v57, %v443_v29  ;;  %v434_v34 = vmul.f32 %v1182_v0, %v433_v30  ;;  %vm472_vm12 = vmor %vm470_vm11, %vm471_vm6  ;;  %v458_v38 = vsel %vm457_vm7, %v1233_v53, %v454_v26  ;;  %v483_v0 = vmul.f32 %v1247_v62, %v482_v27 }
 0x2d0   :  { %v449_v36 = vmul.f32 %v1179_v63, %v448_v33  ;;  %v473_v63 = vsel %vm472_vm12, %v1239_v56, %v469_v31  ;;  %vm460_vm0 = vcmp.eq.f32.partialorder %v459_v35, 8.507059e+37  ;;  %vm475_vm10 = vcmp.eq.f32.partialorder %v474_v37, 8.507059e+37 }
 0x2d1   :  { %542 = vperm.xlu1 %863, %v434_v34   ;;  %v463_v46 = vsel %vm460_vm0, %v462_v40, %v458_v38  ;;  %v478_v49 = vsel %vm475_vm10, %v477_v45, %v473_v63  ;;  %v484_v50 = vadd.f32 %v1247_v62, %v483_v0  ;;  %vm486_vm6 = vweird.f32 %v1247_v62 }
 0x2d2   :  { %569 = vperm.xlu0 %862, %v449_v36   ;;  %v499_v53 = vadd.f32 %v1252_v4, %v498_v44  ;;  %v464_v56 = vmul.f32 %v1177_v61, %v463_v46  ;;  %vm485_vm14 = vweird.f32 %v1221_v42  ;;  %v489_v57 = vand.u32 2147483647, %v1221_v42 }
 0x2d3   :  { %v512_v58 = vsub.f32 1.0, %v511_v52  ;;  %v479_v59 = vmul.f32 %v1186_v5, %v478_v49  ;;  %vm500_vm15 = vweird.f32 %v1223_v43  ;;  %v504_v60 = vand.u32 2147483647, %v1223_v43  ;;  %vm487_vm9 = vmor %vm485_vm14, %vm486_vm6 }
 0x2d4   :  { %vm502_vm11 = vmor %vm500_vm15, %vm501_vm13  ;;  %v488_v1 = vsel %vm487_vm9, %v1247_v62, %v484_v50  ;;  %v492_v3 = vor.u32 1.1754944e-38, %v491_v54  ;;  %v528_v42 = vmul.f32 %v1268_v28, %v527_v55  ;;  %v507_v12 = vor.u32 1.1754944e-38, %v506_v47 }
 0x2d5   :  { %v513_v2 = vmul.f32 %v1287_v39, %v512_v58  ;;  %v503_v61 = vsel %vm502_vm11, %v1252_v4, %v499_v53  ;;  %vm490_vm7 = vcmp.eq.f32.partialorder %v489_v57, 8.507059e+37  ;;  %vm505_vm12 = vcmp.eq.f32.partialorder %v504_v60, 8.507059e+37 }
 0x2d6   :  { %v493_v5 = vsel %vm490_vm7, %v492_v3, %v488_v1  ;;  %v508_v13 = vsel %vm505_vm12, %v507_v12, %v503_v61  ;;  %vm516_vm0 = vweird.f32 %v1287_v39  ;;  %v529_v14 = vadd.f32 %v1268_v28, %v528_v42 }
 0x2d7   :  { %v514_v43 = vadd.f32 %v1287_v39, %v513_v2  ;;  %vm531_vm10 = vweird.f32 %v1268_v28  ;;  %v521_v62 = vand.u32 2147483648, %v1231_v51  ;;  %v494_v4 = vmul.f32 %v1188_v6, %v493_v5 }
 0x2d8   :  { %v536_v15 = vand.u32 2147483648, %v1229_v48  ;;  %vm515_vm6 = vweird.f32 %v1231_v51  ;;  %v519_v16 = vand.u32 2147483647, %v1231_v51  ;;  %v509_v17 = vmul.f32 %v1195_v10, %v508_v13 }
 0x2d9   :  { %596 = vperm.xlu1 %863, %v464_v56   ;;  %vm530_vm13 = vweird.f32 %v1229_v48  ;;  %v534_v19 = vand.u32 2147483647, %v1229_v48  ;;  %vm517_vm14 = vmor %vm515_vm6, %vm516_vm0  ;;  %v522_v21 = vor.u32 1.1754944e-38, %v521_v62  ;;  %vm1382_vm7 = vcmask 1046534  }
 0x2da   :  { %623 = vperm.xlu0 %862, %v479_v59   ;;  %vm532_vm15 = vmor %vm530_vm13, %vm531_vm10  ;;  %v518_v20 = vsel %vm517_vm14, %v1287_v39, %v514_v43  ;;  %v537_v22 = vor.u32 1.1754944e-38, %v536_v15  ;;  %vm520_vm9 = vcmp.eq.f32.partialorder %v519_v16, 8.507059e+37  ;;  %vm1383_vm12 = vcmask 1047559  }
 0x2db   :  { %v533_v6 = vsel %vm532_vm15, %v1268_v28, %v529_v14  ;;  %vm535_vm11 = vcmp.eq.f32.partialorder %v534_v19, 8.507059e+37  ;;  %v523_v23 = vsel %vm520_vm9, %v522_v21, %v518_v20 }
 0x2dc   :  { %v538_v51 = vsel %vm535_vm11, %v537_v22, %v533_v6  ;;  %v524_v10 = vmul.f32 %v1197_v11, %v523_v23 }
 0x2dd   :  { %v539_v24 = vmul.f32 %v1191_v8, %v538_v51 }
 0x2e1   :  { %650 = vperm.xlu1 %863, %v494_v4  }
 0x2e2   :  { %677 = vperm.xlu0 %862, %v509_v17  }
 0x2e9   :  { %704 = vperm.xlu1 %863, %v524_v10  }
 0x2ea   :  { %731 = vperm.xlu0 %862, %v539_v24  }
 0x343   :  { %v543_v48 = vpop.permute.xlu1 %542 }
 0x344   :  { %v570_v25 = vpop.permute.xlu0 %569  ;;  %v544_v26 = vperm.slane %v543_v48, %v1159_v18 }
 0x345   :  { %v571_v27 = vperm.slane %v570_v25, %v1159_v18 }
 0x346   :  { %833 = vmatmul.msk.f32.vlgmr.msrb.gmra.mxu2 %vm307_vm8, %v544_v26 }
 0x347   :  { %834 = vmatmul.msk.f32.vlgmr.msrb.gmra.mxu3 %vm307_vm8, %v571_v27  ;;  %697 = vmatpush.msrb.mxu2 %v1134_v9  ;;  %v780_v33 = vsel %vm292_vm1, %v571_v27, %v544_v26 }
 0x348   :  { %724 = vmatpush.msrb.mxu3 %v1130_v7 }
 0x34b   :  { %v597_v28 = vpop.permute.xlu1 %596 }
 0x34c   :  { %v624_v11 = vpop.permute.xlu0 %623  ;;  %v598_v8 = vperm.slane %v597_v28, %v1159_v18 }
 0x34d   :  { %v625_v29 = vperm.slane %v624_v11, %v1159_v18 }
 0x34e   :  { %835 = vmatmul.msk.f32.vlgmr.msra.gmra.mxu2 %vm307_vm8, %v598_v8  ;;  %v781_v7 = vsel %vm294_vm2, %v598_v8, %v780_v33 }
 0x34f   :  { %836 = vmatmul.msk.f32.vlgmr.msra.gmra.mxu3 %vm307_vm8, %v625_v29  ;;  %v782_v34 = vsel %vm296_vm3, %v625_v29, %v781_v7 }
 0x353   :  { %v651_v30 = vpop.permute.xlu1 %650 }
 0x354   :  { %v678_v31 = vpop.permute.xlu0 %677  ;;  %v652_v32 = vperm.slane %v651_v30, %v1159_v18 }
 0x355   :  { %v679_v9 = vperm.slane %v678_v31, %v1159_v18 }
 0x356   :  { %837 = vmatmul.msk.f32.vlgmr.msra.gmra.mxu1 %vm307_vm8, %v652_v32  ;;  %v783_v35 = vsel %vm298_vm4, %v652_v32, %v782_v34 }
 0x357   :  { %838 = vmatmul.msk.f32.vlgmr.msrb.gmra.mxu2 %vm307_vm8, %v679_v9  ;;  %v784_v39 = vsel %vm300_vm5, %v679_v9, %v783_v35 }
 0x35b   :  { %v705_v36 = vpop.permute.xlu1 %704 }
 0x35c   :  { %v732_v37 = vpop.permute.xlu0 %731  ;;  %v706_v38 = vperm.slane %v705_v36, %v1159_v18 }
 0x35d   :  { %v733_v0 = vperm.slane %v732_v37, %v1159_v18 }
 0x35e   :  { %v785_v63 = vsel %vm1382_vm7, %v706_v38, %v784_v39  ;;  %839 = vmatmul.msk.f32.vlgmr.msrb.gmra.mxu3 %vm307_vm8, %v706_v38 }
 0x35f   :  { %840 = vmatmul.msk.f32.vlgmr.msrb.gmra.mxu1 %vm307_vm8, %v733_v0  ;;  %v786_v40 = vsel %vm1383_vm12, %v733_v0, %v785_v63 }
 0x360   :  { %788 = vst.msk [vmem:[#allocation11] sm:$0xff] %vm307_vm8, %v786_v40 }
 0x361   :  { %810 = dma.vmem_to_hbm [thread:$0]  %s806_s22, 128, %s808_s25, [#allocation12]  }
 0x3c9   :  { %v564_v18 = vpop.f32.mrf.mxu2 }
 0x3ca   :  { %v591_v44 = vpop.f32.mrf.mxu3 }
 0x3cb   :  { %v764_v46 = vrot.slane %v591_v44, 7 }
 0x3cd   :  { %v765_v50 = vsel %vm292_vm1, %v764_v46, %v564_v18  ;;  %vm1384_vm1 = vmmov %vm1382_vm7 }
 0x3d1   :  { %v618_v41 = vpop.f32.mrf.mxu2 }
 0x3d2   :  { %v766_v47 = vrot.slane %v618_v41, 6  ;;  %v645_v49 = vpop.f32.mrf.mxu3 }
 0x3d3   :  { %v672_v45 = vpop.f32.mrf.mxu1  ;;  %v768_v52 = vrot.slane %v645_v49, 5 }
 0x3d4   :  { %v767_v53 = vsel %vm294_vm2, %v766_v47, %v765_v50  ;;  %v770_v55 = vrot.slane %v672_v45, 4  ;;  %vm1385_vm2 = vmmov %vm1383_vm12 }
 0x3d5   :  { %v769_v56 = vsel %vm296_vm3, %v768_v52, %v767_v53  ;;  %vm1386_vm3 = vcmask 261120  }
 0x3d6   :  { %v771_v60 = vsel %vm298_vm4, %v770_v55, %v769_v56 }
 0x3da   :  { %v699_v54 = vpop.f32.mrf.mxu2 }
 0x3db   :  { %v772_v57 = vrot.slane %v699_v54, 3 }
 0x3dc   :  { %v753_v58 = vpop.f32.mrf.mxu1 }
 0x3dd   :  { %v773_v2 = vsel %vm300_vm5, %v772_v57, %v771_v60  ;;  %v776_v61 = vrot.slane %v753_v58, 1 }
 0x3e1   :  { %v726_v59 = vpop.f32.mrf.mxu3 }
 0x3e2   :  { %v774_v1 = vrot.slane %v726_v59, 2 }
 0x3e4   :  { %v775_v3 = vsel %vm1384_vm1, %v774_v1, %v773_v2 }
 0x3e5   :  { %v777_v42 = vsel %vm1385_vm2, %v776_v61, %v775_v3 }
 0x3e6   :  { %779 = vst.msk [vmem:[#allocation10] sm:$0xff] %vm1386_vm3, %v777_v42 }
 0x3e7   :  { %799 = dma.vmem_to_hbm [thread:$0]  %s795_s26, 128, %s797_s29, [#allocation4]  }
 0x3e8   :  { %1065 = dma.done.wait [#allocation4], 128  }
 0x3e9   :  { %1066 = vsyncadd [#allocation4], 4294967168 }
 0x3ea   :  { %1067 = dma.done.wait [#allocation12], 128  }
 0x3eb   :  { %1068 = vsyncadd [#allocation12], 4294967168 }
 0x3ec   :  { %819 = vsyncpa [#allocation3], 1 }
 0x3ed   :  { %820 = vsyncpa [#allocation6], 1 }
 0x3ee   :  { %821 = vsyncpa [#allocation9], 1 }
 0x3ef   :  { %822 = vsyncpa [#allocation4], 1 }
 0x3f0   :  { %823 = vsyncpa [#allocation12], 1 }

</bundles_post_ra>
